<compile_context>
chip_gen: v5e
topology: v5e:2x2
jax: 0.10.0
libtpu: 0.0.40
codegen_flags: <defaults>
</compile_context>

<pallas_src>
import math
from functools import partial

import jax
import jax.numpy as jnp
from jax.experimental import pallas as pl
from jax.experimental.pallas import tpu as pltpu

OUT_LANES = 128      # lane-dense output slab width: [action | logp | value | padding]
W_ROWS = 4 * 128     # packed weight slab rows (4 layers x 128)


def _round_up(x, m):
    return (x + m - 1) // m * m


# ---------------------------------------------------------------------------
# Kernel: one batch tile of the fused actor+critic forward + Gaussian sampling.
# ---------------------------------------------------------------------------
def actor_critic_kernel(state_ref, noise_ref, w_ref, m_ref, out_ref):
    x = state_ref[...]                       # (TB, S_pad) f32
    noise = noise_ref[...]                   # (TB, A)     f32 ~ N(0, 1)
    tb, s_pad = x.shape
    a = noise.shape[1]

    # Static, sublane-aligned views into the resident bf16 weight slab.
    w1 = w_ref[0:s_pad, :]                   # (S_pad, 128)  [actor | critic]; rows >= S are 0
    w2 = w_ref[128:256, :]                   # (128, 128)    block-diagonal
    w3 = w_ref[256:384, :]                   # (128, 128)    block-diagonal
    w4 = w_ref[384:512, :]                   # (128, 128)    actor->[0:A), critic->lane A+1

    # Resident f32 bias / std / mask rows.
    b1 = m_ref[0:1, :]
    b2 = m_ref[1:2, :]
    b3 = m_ref[2:3, :]
    b4 = m_ref[3:4, :]                       # lane A carries the Gaussian log-prob constant
    std = m_ref[4:5, :]                      # sqrt(action_var), zero outside actor lanes
    amask = m_ref[5:6, :]                    # 1.0 on actor lanes [0:A), 0 elsewhere
    lpmask = m_ref[6:7, :]                   # 1.0 on the log-prob lane A only

    bf16 = jnp.bfloat16
    # Fused actor+critic MLP: 4 bf16 MXU matmuls with f32 accumulation; tanh in f32 (EUP).
    h = jnp.tanh(jnp.dot(x.astype(bf16), w1, preferred_element_type=jnp.float32) + b1)
    h = jnp.tanh(jnp.dot(h.astype(bf16), w2, preferred_element_type=jnp.float32) + b2)
    h = jnp.tanh(jnp.dot(h.astype(bf16), w3, preferred_element_type=jnp.float32) + b3)
    y = jnp.dot(h.astype(bf16), w4, preferred_element_type=jnp.float32) + b4

    # Tanh only on the actor-mean lanes (mask FMA); value / log-prob lanes pass through.
    mean_val = y + amask * (jnp.tanh(y) - y)

    # Place the A noise lanes at lanes [0:A) of a 128-lane vector.
    noise_pad = jnp.concatenate(
        [noise, jnp.zeros((tb, OUT_LANES - a), jnp.float32)], axis=-1)

    # Diagonal Gaussian:  action = mean + std * z,   logp = const - 0.5 * sum(z^2)
    # (the constant -0.5*sum(log var) - 0.5*A*log(2*pi) is already baked into b4[lane A]).
    z2_sum = jnp.sum(noise_pad * noise_pad, axis=-1, keepdims=True)   # (TB, 1)  f32, exact

    out_ref[...] = mean_val + std * noise_pad + lpmask * (-0.5 * z2_sum)


# ---------------------------------------------------------------------------
# Wrapper: batch-gridded pallas_call with resident weight/misc slabs.
# ---------------------------------------------------------------------------
@partial(jax.jit, static_argnames=("action_dim", "block_b"))
def actor_critic_act(state, noise, w_slab, misc, *, action_dim, block_b=2048):
    """Pallas-fused ActorCritic.act: returns (action, log_prob, state_value).

    state: (B, state_dim) f32;  noise: (B, action_dim) f32 standard-normal draws.
    """
    B, S = state.shape
    A = action_dim
    assert S <= 128 and A + 2 <= OUT_LANES

    # Pad state_dim to a multiple of 8 (keeps the w1 slab view sublane-aligned).
    S_pad = _round_up(S, 8)
    if S_pad != S:
        state = jnp.pad(state, ((0, 0), (0, S_pad - S)))

    # Batch tile: large tiles amortize the ~0.35us/step pipeline overhead.  Even at
    # TB=2048 the double-buffered tiles are ~2.7 MB, well under v5e's 16 MiB default
    # scoped VMEM and v7x's 64 MiB physical VMEM.
    TB = _round_up(min(block_b, B), 8)
    Bp = _round_up(B, TB)
    if Bp != B:
        state = jnp.pad(state, ((0, Bp - B), (0, 0)))
        noise = jnp.pad(noise, ((0, Bp - B), (0, 0)))

    out = pl.pallas_call(
        actor_critic_kernel,
        out_shape=jax.ShapeDtypeStruct((Bp, OUT_LANES), jnp.float32),
        grid_spec=pltpu.PrefetchScalarGridSpec(
            num_scalar_prefetch=0,
            grid=(pl.cdiv(Bp, TB),),
            in_specs=[
                pl.BlockSpec((TB, S_pad), lambda i: (i, 0)),     # batch-tiled state
                pl.BlockSpec((TB, A), lambda i: (i, 0)),         # batch-tiled noise (A lanes)
                pl.BlockSpec((W_ROWS, 128), lambda i: (0, 0)),   # weights: resident, DMA once
                pl.BlockSpec((8, 128), lambda i: (0, 0)),        # misc: resident, DMA once
            ],
            out_specs=pl.BlockSpec((TB, OUT_LANES), lambda i: (i, 0)),
        ),
        compiler_params=pltpu.CompilerParams(
            dimension_semantics=("parallel",),   # shard batch tiles across v7x's 2 TCs
        ),
    )(state, noise, w_slab, misc)

    action = out[:B, 0:A]
    logp = out[:B, A:A + 1]
    value = out[:B, A + 1:A + 2]
    return action, logp, value


# ---------------------------------------------------------------------------
# Parameter construction / packing (host-side, done once).
# ---------------------------------------------------------------------------
def init_linear(key, fan_in, fan_out):
    """nn.Linear-style init (uniform +-1/sqrt(fan_in)); weight stored as (in, out)."""
    kw, kb = jax.random.split(key)
    bound = 1.0 / math.sqrt(fan_in)
    w = jax.random.uniform(kw, (fan_in, fan_out), jnp.float32, -bound, bound)
    b = jax.random.uniform(kb, (1, fan_out), jnp.float32, -bound, bound)
    return w, b


def make_actor_critic_params(key, state_dim, action_dim, action_std):
    keys = jax.random.split(key, 8)
    aw1, ab1 = init_linear(keys[0], state_dim, 64)
    aw2, ab2 = init_linear(keys[1], 64, 64)
    aw3, ab3 = init_linear(keys[2], 64, 32)
    aw4, ab4 = init_linear(keys[3], 32, action_dim)
    cw1, cb1 = init_linear(keys[4], state_dim, 64)
    cw2, cb2 = init_linear(keys[5], 64, 64)
    cw3, cb3 = init_linear(keys[6], 64, 32)
    cw4, cb4 = init_linear(keys[7], 32, 1)
    action_var = jnp.full((1, action_dim), action_std * action_std, jnp.float32)
    return (aw1, ab1, aw2, ab2, aw3, ab3, aw4, ab4,
            cw1, cb1, cw2, cb2, cw3, cb3, cw4, cb4,
            action_var)


def pack_params(params, action_dim):
    """Pack all weights into a bf16 (512,128) slab + f32 (8,128) bias/std/mask slab."""
    (aw1, ab1, aw2, ab2, aw3, ab3, aw4, ab4,
     cw1, cb1, cw2, cb2, cw3, cb3, cw4, cb4, var) = params
    S = aw1.shape[0]
    A = action_dim
    assert S <= 128 and A + 2 <= OUT_LANES

    w = jnp.zeros((W_ROWS, 128), jnp.float32)
    # layer 1: concat [actor | critic]
    w = w.at[0:S, 0:64].set(aw1)
    w = w.at[0:S, 64:128].set(cw1)
    # layer 2: block-diagonal
    w = w.at[128:192, 0:64].set(aw2)
    w = w.at[192:256, 64:128].set(cw2)
    # layer 3: block-diagonal (actor -> lanes 0:32, critic -> lanes 32:64)
    w = w.at[256:320, 0:32].set(aw3)
    w = w.at[320:384, 32:64].set(cw3)
    # layer 4: actor mean -> lanes [0:A), critic value -> lane A+1
    w = w.at[384:416, 0:A].set(aw4)
    w = w.at[416:448, A + 1:A + 2].set(cw4)
    w = w.astype(jnp.bfloat16)       # feed the MXU bf16; f32 accumulation in-kernel

    m = jnp.zeros((8, 128), jnp.float32)
    m = m.at[0, 0:64].set(ab1.reshape(-1))
    m = m.at[0, 64:128].set(cb1.reshape(-1))
    m = m.at[1, 0:64].set(ab2.reshape(-1))
    m = m.at[1, 64:128].set(cb2.reshape(-1))
    m = m.at[2, 0:32].set(ab3.reshape(-1))
    m = m.at[2, 32:64].set(cb3.reshape(-1))
    m = m.at[3, 0:A].set(ab4.reshape(-1))
    m = m.at[3, A + 1].set(cb4.reshape(-1)[0])
    # diagonal-Gaussian log_prob constant baked into the logp lane's layer-4 bias
    logc = -0.5 * jnp.sum(jnp.log(var)) - 0.5 * A * math.log(2.0 * math.pi)
    m = m.at[3, A].set(logc)
    # std row (sqrt folded out of the kernel), zero-padded beyond the actor lanes
    m = m.at[4, 0:A].set(jnp.sqrt(var).reshape(-1))
    # precomputed mask rows (replace in-kernel iota/compare/select)
    m = m.at[5, 0:A].set(1.0)        # actor-lane mask
    m = m.at[6, A].set(1.0)          # log-prob lane one-hot
    return w, m


# ---------------------------------------------------------------------------
# Plain-JAX f32 reference (unpacked params) for correctness checking.
# ---------------------------------------------------------------------------
def reference_act(state, noise, params, action_dim):
    (aw1, ab1, aw2, ab2, aw3, ab3, aw4, ab4,
     cw1, cb1, cw2, cb2, cw3, cb3, cw4, cb4, var) = params
    h = jnp.tanh(state @ aw1 + ab1)
    h = jnp.tanh(h @ aw2 + ab2)
    h = jnp.tanh(h @ aw3 + ab3)
    mean = jnp.tanh(h @ aw4 + ab4)
    c = jnp.tanh(state @ cw1 + cb1)
    c = jnp.tanh(c @ cw2 + cb2)
    c = jnp.tanh(c @ cw3 + cb3)
    value = c @ cw4 + cb4
    std = jnp.sqrt(var)
    action = mean + std * noise
    diff = action - mean
    A = action_dim
    logp = (-0.5 * jnp.sum(diff * diff / var, axis=-1, keepdims=True)
            - 0.5 * jnp.sum(jnp.log(var), axis=-1, keepdims=True)
            - 0.5 * A * math.log(2.0 * math.pi))
    return action, logp, value


if __name__ == "__main__":
    state_dim, action_dim, action_std = 32, 8, 0.5
    batch = 40   # deliberately NOT a multiple of the batch tile -> exercises padding

    key = jax.random.PRNGKey(0)
    k_params, k_state, k_noise = jax.random.split(key, 3)

    params = make_actor_critic_params(k_params, state_dim, action_dim, action_std)
    w_slab, misc = pack_params(params, action_dim)

    state = jax.random.normal(k_state, (batch, state_dim), jnp.float32)
    noise = jax.random.normal(k_noise, (batch, action_dim), jnp.float32)

    # Small tile -> multi-step batch grid (resident weights + pipelining path).
    action, logp, value = actor_critic_act(state, noise, w_slab, misc,
                                           action_dim=action_dim, block_b=16)
    jax.block_until_ready((action, logp, value))

    # Default (large) tile -> single-step grid; must agree with the tiled run.
    action1, logp1, value1 = actor_critic_act(state, noise, w_slab, misc,
                                              action_dim=action_dim)
    jax.block_until_ready((action1, logp1, value1))
    assert jnp.allclose(action, action1, atol=1e-5), "tiling-dependent action"
    assert jnp.allclose(logp, logp1, atol=1e-5), "tiling-dependent log_prob"
    assert jnp.allclose(value, value1, atol=1e-5), "tiling-dependent value"

    ref_action, ref_logp, ref_value = reference_act(state, noise, params, action_dim)
    # bf16 weights/activations on the MXU -> loosened tolerances for action/value; the
    # log_prob path (sum(noise^2) + constant) stays entirely in f32 and is tight.
    assert jnp.allclose(action, ref_action, atol=5e-2, rtol=5e-2), "action mismatch"
    assert jnp.allclose(value, ref_value, atol=5e-2, rtol=5e-2), "value mismatch"
    assert jnp.allclose(logp, ref_logp, atol=1e-3, rtol=1e-4), "log_prob mismatch"

    print("KERNEL_OK")
</pallas_src>

<mosaic_0001>
module attributes {stable_mosaic.version = 11 : i64} {
  func.func @actor_critic_kernel(%arg0: i32, %arg1: memref<16x32xf32, #tpu.memory_space<vmem>>, %arg2: memref<16x8xf32, #tpu.memory_space<vmem>>, %arg3: memref<512x128xbf16, #tpu.memory_space<vmem>>, %arg4: memref<8x128xf32, #tpu.memory_space<vmem>>, %arg5: memref<16x128xf32, #tpu.memory_space<vmem>>) attributes {dimension_semantics = [#tpu.dimension_semantics<parallel>], iteration_bounds = array<i64: 3>, scalar_prefetch = 0 : i64, scratch_operands = 0 : i64, tpu.core_type = #tpu.core_type<tc>, window_params = [{transform_indices = @transform_0, window_bounds = array<i64: 16, 32>}, {transform_indices = @transform_1, window_bounds = array<i64: 16, 8>}, {pipeline_mode = #tpu.pipeline_mode<synchronous>, transform_indices = @transform_2, window_bounds = array<i64: 512, 128>}, {pipeline_mode = #tpu.pipeline_mode<synchronous>, transform_indices = @transform_3, window_bounds = array<i64: 8, 128>}, {transform_indices = @transform_4, window_bounds = array<i64: 16, 128>}]} {
    %c0 = arith.constant 0 : index
    %c0_0 = arith.constant 0 : index
    %0 = vector.load %arg1[%c0, %c0_0] : memref<16x32xf32, #tpu.memory_space<vmem>>, vector<16x32xf32>
    %c0_1 = arith.constant 0 : index
    %c0_2 = arith.constant 0 : index
    %1 = vector.load %arg2[%c0_1, %c0_2] : memref<16x8xf32, #tpu.memory_space<vmem>>, vector<16x8xf32>
    %c0_3 = arith.constant 0 : index
    %c0_4 = arith.constant 0 : index
    %2 = vector.load %arg3[%c0_3, %c0_4] : memref<512x128xbf16, #tpu.memory_space<vmem>>, vector<32x128xbf16>
    %c128 = arith.constant 128 : index
    %c0_5 = arith.constant 0 : index
    %3 = vector.load %arg3[%c128, %c0_5] : memref<512x128xbf16, #tpu.memory_space<vmem>>, vector<128x128xbf16>
    %c256 = arith.constant 256 : index
    %c0_6 = arith.constant 0 : index
    %4 = vector.load %arg3[%c256, %c0_6] : memref<512x128xbf16, #tpu.memory_space<vmem>>, vector<128x128xbf16>
    %c384 = arith.constant 384 : index
    %c0_7 = arith.constant 0 : index
    %5 = vector.load %arg3[%c384, %c0_7] : memref<512x128xbf16, #tpu.memory_space<vmem>>, vector<128x128xbf16>
    %c0_8 = arith.constant 0 : index
    %c0_9 = arith.constant 0 : index
    %6 = vector.load %arg4[%c0_8, %c0_9] : memref<8x128xf32, #tpu.memory_space<vmem>>, vector<1x128xf32>
    %c1 = arith.constant 1 : index
    %c0_10 = arith.constant 0 : index
    %7 = vector.load %arg4[%c1, %c0_10] : memref<8x128xf32, #tpu.memory_space<vmem>>, vector<1x128xf32>
    %c2 = arith.constant 2 : index
    %c0_11 = arith.constant 0 : index
    %8 = vector.load %arg4[%c2, %c0_11] : memref<8x128xf32, #tpu.memory_space<vmem>>, vector<1x128xf32>
    %c3 = arith.constant 3 : index
    %c0_12 = arith.constant 0 : index
    %9 = vector.load %arg4[%c3, %c0_12] : memref<8x128xf32, #tpu.memory_space<vmem>>, vector<1x128xf32>
    %c4 = arith.constant 4 : index
    %c0_13 = arith.constant 0 : index
    %10 = vector.load %arg4[%c4, %c0_13] : memref<8x128xf32, #tpu.memory_space<vmem>>, vector<1x128xf32>
    %c5 = arith.constant 5 : index
    %c0_14 = arith.constant 0 : index
    %11 = vector.load %arg4[%c5, %c0_14] : memref<8x128xf32, #tpu.memory_space<vmem>>, vector<1x128xf32>
    %c6 = arith.constant 6 : index
    %c0_15 = arith.constant 0 : index
    %12 = vector.load %arg4[%c6, %c0_15] : memref<8x128xf32, #tpu.memory_space<vmem>>, vector<1x128xf32>
    %13 = arith.truncf %0 : vector<16x32xf32> to vector<16x32xbf16>
    %cst = arith.constant dense<0.000000e+00> : vector<16x128xf32>
    %14 = tpu.matmul %13, %2, %cst {dimension_numbers = #tpu.dot_dimension_numbers<[1], [0], [0], [1], [0, 0, 1, 1], [], []>} : vector<16x32xbf16>, vector<32x128xbf16>, vector<16x128xf32> -> vector<16x128xf32>
    %15 = vector.broadcast %6 : vector<1x128xf32> to vector<16x128xf32>
    %16 = arith.addf %14, %15 : vector<16x128xf32>
    %17 = math.tanh %16 : vector<16x128xf32>
    %18 = arith.truncf %17 : vector<16x128xf32> to vector<16x128xbf16>
    %cst_16 = arith.constant dense<0.000000e+00> : vector<16x128xf32>
    %19 = tpu.matmul %18, %3, %cst_16 {dimension_numbers = #tpu.dot_dimension_numbers<[1], [0], [0], [1], [0, 0, 1, 1], [], []>} : vector<16x128xbf16>, vector<128x128xbf16>, vector<16x128xf32> -> vector<16x128xf32>
    %20 = vector.broadcast %7 : vector<1x128xf32> to vector<16x128xf32>
    %21 = arith.addf %19, %20 : vector<16x128xf32>
    %22 = math.tanh %21 : vector<16x128xf32>
    %23 = arith.truncf %22 : vector<16x128xf32> to vector<16x128xbf16>
    %cst_17 = arith.constant dense<0.000000e+00> : vector<16x128xf32>
    %24 = tpu.matmul %23, %4, %cst_17 {dimension_numbers = #tpu.dot_dimension_numbers<[1], [0], [0], [1], [0, 0, 1, 1], [], []>} : vector<16x128xbf16>, vector<128x128xbf16>, vector<16x128xf32> -> vector<16x128xf32>
    %25 = vector.broadcast %8 : vector<1x128xf32> to vector<16x128xf32>
    %26 = arith.addf %24, %25 : vector<16x128xf32>
    %27 = math.tanh %26 : vector<16x128xf32>
    %28 = arith.truncf %27 : vector<16x128xf32> to vector<16x128xbf16>
    %cst_18 = arith.constant dense<0.000000e+00> : vector<16x128xf32>
    %29 = tpu.matmul %28, %5, %cst_18 {dimension_numbers = #tpu.dot_dimension_numbers<[1], [0], [0], [1], [0, 0, 1, 1], [], []>} : vector<16x128xbf16>, vector<128x128xbf16>, vector<16x128xf32> -> vector<16x128xf32>
    %30 = vector.broadcast %9 : vector<1x128xf32> to vector<16x128xf32>
    %31 = arith.addf %29, %30 : vector<16x128xf32>
    %32 = math.tanh %31 : vector<16x128xf32>
    %33 = arith.subf %32, %31 : vector<16x128xf32>
    %34 = vector.broadcast %11 : vector<1x128xf32> to vector<16x128xf32>
    %35 = arith.mulf %34, %33 : vector<16x128xf32>
    %36 = arith.addf %31, %35 : vector<16x128xf32>
    %cst_19 = arith.constant 0.000000e+00 : f32
    %37 = vector.broadcast %cst_19 : f32 to vector<16x120xf32>
    %38 = tpu.concatenate %1, %37 in 1 : vector<16x8xf32>, vector<16x120xf32> -> vector<16x128xf32>
    %39 = arith.mulf %38, %38 : vector<16x128xf32>
    %cst_20 = arith.constant dense<0.000000e+00> : vector<16xf32>
    %40 = vector.multi_reduction <add>, %39, %cst_20 [1] : vector<16x128xf32> to vector<16xf32>
    %41 = vector.shape_cast %40 : vector<16xf32> to vector<16x1xf32>
    %42 = vector.broadcast %10 : vector<1x128xf32> to vector<16x128xf32>
    %43 = arith.mulf %42, %38 : vector<16x128xf32>
    %44 = arith.addf %36, %43 : vector<16x128xf32>
    %cst_21 = arith.constant -5.000000e-01 : f32
    %45 = vector.broadcast %cst_21 : f32 to vector<16x1xf32>
    %46 = arith.mulf %45, %41 : vector<16x1xf32>
    %47 = vector.broadcast %12 : vector<1x128xf32> to vector<16x128xf32>
    %48 = vector.broadcast %46 : vector<16x1xf32> to vector<16x128xf32>
    %49 = arith.mulf %47, %48 : vector<16x128xf32>
    %50 = arith.addf %44, %49 : vector<16x128xf32>
    %c0_22 = arith.constant 0 : index
    %c0_23 = arith.constant 0 : index
    %51 = vector.load %arg5[%c0_22, %c0_23] : memref<16x128xf32, #tpu.memory_space<vmem>>, vector<16x128xf32>
    tpu.vector_store %arg5[%c0_22, %c0_23], %50 {strides = array<i32>} : memref<16x128xf32, #tpu.memory_space<vmem>>, vector<16x128xf32>,
    return
  }
  func.func @transform_0(%arg0: i32) -> (i32, i32) {
    %c0_i32 = arith.constant 0 : i32
    %c0_i32_0 = arith.constant 0 : i32
    return %arg0, %c0_i32 : i32, i32
  }
  func.func @transform_1(%arg0: i32) -> (i32, i32) {
    %c0_i32 = arith.constant 0 : i32
    %c0_i32_0 = arith.constant 0 : i32
    return %arg0, %c0_i32 : i32, i32
  }
  func.func @transform_2(%arg0: i32) -> (i32, i32) {
    %c0_i32 = arith.constant 0 : i32
    %c0_i32_0 = arith.constant 0 : i32
    %c0_i32_1 = arith.constant 0 : i32
    return %c0_i32, %c0_i32_0 : i32, i32
  }
  func.func @transform_3(%arg0: i32) -> (i32, i32) {
    %c0_i32 = arith.constant 0 : i32
    %c0_i32_0 = arith.constant 0 : i32
    %c0_i32_1 = arith.constant 0 : i32
    return %c0_i32, %c0_i32_0 : i32, i32
  }
  func.func @transform_4(%arg0: i32) -> (i32, i32) {
    %c0_i32 = arith.constant 0 : i32
    %c0_i32_0 = arith.constant 0 : i32
    return %arg0, %c0_i32 : i32, i32
  }
}

</mosaic_0001>

<bundles_post_ra>
// kernel: actor_critic_act.1
= control target key start
LH: loop header
LB: loop body
LE: loop exit
PB: predicated region body
PF: predicated region fallthrough
CT: control target
= control target key end

     0   :  { %9 = vsyncpa [#allocation3], 0  ;;  %s906_s15 = smov 0   ;;  %s955_s0 = inlined_call_operand.vmem [shape: f32[48,32], index: 0, kind: input, shape index: {}]   ;;  %s956_s1 = inlined_call_operand.vmem [shape: f32[48,8], index: 1, kind: input, shape index: {}]   ;;  %s957_s2 = inlined_call_operand.hbm [shape: bf16[512,128], index: 2, kind: input, shape index: {}]   ;;  %s958_s3 = inlined_call_operand.vmem [shape: f32[8,128], index: 3, kind: input, shape index: {}]   ;;  %s959_s4 = inlined_call_operand.vmem [shape: f32[48,128], index: 4, kind: output, shape index: {}]  }
   0x1 LB: > { %s151_s18 = sshll.u32 %s957_s2, 4  ;;  %s646_s19 = sadd.s32 4294967295, %s876_s15   ;;  %s876_s15 = sphi %s906_s15, %s15_s15   ;;  %s152_s18 = int_to_ptr.hbm [resolvable:$true] %s151_s18 }
   0x2   : > { %p648_p0 = scmp.ge.s32.totalorder %s876_s15, 1  ;;  %p140_p1 = scmp.lt.s32.totalorder %s876_s15, 4 }
   0x3   : > { %p800_p2 = scmp.eq.s32.totalorder %s646_s19, 0  ;;  %s878_s20 = smov [#allocation2]  }
   0x4   : > { %p141_p3 = pnand %p648_p0, %p140_p1  ;;  %s153_s21 = sshll.u32 %s878_s20, 4  ;;  %s154_s21 = int_to_ptr.vmem [resolvable:$true] %s153_s21 }
   0x5   : > { %s879_s22 = smov 64   ;;  %s880_s23 = smov 4  }
   0x6   : > { %p796_p4 = pneg %p141_p3  ;;  %190 = sbr.rel (%p141_p3) target bundleno = 622 (0x26e), region = 36 }
   0x8   : > { %p797_p5 = pnand %p800_p2, %p796_p4 }
   0xa   : > { %799 = dma.hbm_to_vmem [thread:$0]  (!%p797_p5), %s152_s18, 4096, %s154_s21, [#allocation3], %s879_s22, %s879_s22, %s880_s23  }
   0xb   : > { %871 = dma.done.wait (%p800_p2), [#allocation3], 4096  }
   0xc   : > { %873 = vsyncadd (%p800_p2), [#allocation3], 4294963200  ;;  %s653_s24 = sshll.u32 %s646_s19, 1  ;;  %v767_v0 = vld [vmem:[#allocation2 + $0x8] sm:$0xff]  ;;  %v766_v1 = vld [vmem:[#allocation2] sm:$0xff]  ;;  %vm318_vm0 = vcmask 261120  }
   0xd   : > { %p223_p6 = scmp.lt.s32.totalorder %s653_s24, 5  ;;  %v775_v3 = vld [vmem:[#allocation2 + $0x78] sm:$0xff]  ;;  %328 = vmatpush.bf16.msra.mxu0 %v767_v0  ;;  %v774_v5 = vld [vmem:[#allocation2 + $0x70] sm:$0xff]  ;;  %v773_v7 = vld [vmem:[#allocation2 + $0x68] sm:$0xff]  ;;  %vm543_vm1 = vcmask 64512  }
   0xe   : > { %388 = vmatpush.bf16.msra.mxu1 %v775_v3  ;;  %v772_v8 = vld [vmem:[#allocation2 + $0x60] sm:$0xff]  ;;  %v771_v9 = vld [vmem:[#allocation2 + $0x58] sm:$0xff]  ;;  %v770_v10 = vld [vmem:[#allocation2 + $0x50] sm:$0xff] }
   0xf   : > { %s961_s24 = smov (!%p223_p6, %s653_s24), 5  ;;  %v769_v11 = vld [vmem:[#allocation2 + $0x48] sm:$0xff]  ;;  %v768_v12 = vld [vmem:[#allocation2 + $0x40] sm:$0xff]  ;;  %v783_v13 = vld [vmem:[#allocation2 + $0xb8] sm:$0xff] }
  0x10   : > { %s917_s25 = sshll.u32 %s961_s24, 3  ;;  %454 = vmatpush.bf16.msra.mxu2 %v783_v13  ;;  %v782_v14 = vld [vmem:[#allocation2 + $0xb0] sm:$0xff]  ;;  %v781_v15 = vld [vmem:[#allocation2 + $0xa8] sm:$0xff]  ;;  %v813_v17 = vld [vmem:[%s958_s3] ss:$0 sm:$0xff] }
  0x11   : > { %s226_s28 = scalar_lea.vmem %s955_s0, %s917_s25  ;;  %329 = vmatpush.bf16.msra.mxu0 %v766_v1  ;;  %v780_v24 = vld [vmem:[#allocation2 + $0xa0] sm:$0xff]  ;;  %v779_v25 = vld [vmem:[#allocation2 + $0x98] sm:$0xff]  ;;  %v778_v26 = vld [vmem:[#allocation2 + $0x90] sm:$0xff]  ;;  %s232_s9 = scalar_lea.vmem %s956_s1, %s917_s25 }
  0x12   : > { %v241_v2 = vld [vmem:[%s226_s28] sm:$0xff]  ;;  %v242_v4 = vld [vmem:[%s226_s28 + $0x8] sm:$0xff]  ;;  %389 = vmatpush.bf16.msra.mxu1 %v774_v5  ;;  %v791_v29 = vld [vmem:[#allocation2 + $0xf8] sm:$0xff]  ;;  %s238_s23 = scalar_lea.vmem %s959_s4, %s917_s25 }
  0x13   : > { %v304_v6 = vpack.c.bf16 %v242_v4, %v241_v2  ;;  %v777_v27 = vld [vmem:[#allocation2 + $0x88] sm:$0xff]  ;;  %v776_v28 = vld [vmem:[#allocation2 + $0x80] sm:$0xff]  ;;  %520 = vmatpush.bf16.msra.mxu3 %v791_v29  ;;  %v790_v30 = vld [vmem:[#allocation2 + $0xf0] sm:$0xff] }
  0x14   : > { %455 = vmatpush.bf16.msra.mxu2 %v782_v14  ;;  %v789_v31 = vld [vmem:[#allocation2 + $0xe8] sm:$0xff]  ;;  %v814_v33 = vld [vmem:[%s958_s3 + $0x1] ss:$0 sm:$0xff]  ;;  %v787_v41 = vld [vmem:[#allocation2 + $0xd8] sm:$0xff] }
  0x15   : > { %667 = vmatmul.msk.bf16.vlgmr.msra.gmra.mxu0 %vm318_vm0, %v304_v6  ;;  %v788_v40 = vld [vmem:[#allocation2 + $0xe0] sm:$0xff]  ;;  %v786_v42 = vld [vmem:[#allocation2 + $0xd0] sm:$0xff]  ;;  %v785_v43 = vld [vmem:[#allocation2 + $0xc8] sm:$0xff] }
  0x16   : > { %390 = vmatpush.bf16.msra.mxu1 %v773_v7  ;;  %v784_v44 = vld [vmem:[#allocation2 + $0xc0] sm:$0xff]  ;;  %v244_v48 = vld [vmem:[%s232_s9 + $0x8] sm:$0xff] }
  0x17   : > { %521 = vmatpush.bf16.msra.mxu3 %v790_v30  ;;  %v243_v45 = vld [vmem:[%s232_s9] sm:$0xff]  ;;  %v545_v49 = vsel %vm543_vm1, %v244_v48, 0.0 }
  0x18   : > { %456 = vmatpush.bf16.msra.mxu2 %v781_v15  ;;  %v544_v46 = vsel %vm543_vm1, %v243_v45, 0.0  ;;  %v547_v50 = vmul.f32 %v545_v49, %v545_v49  ;;  %v815_v52 = vld [vmem:[%s958_s3 + $0x2] ss:$0 sm:$0xff]  ;;  %v817_v59 = vld [vmem:[%s958_s3 + $0x3] ss:$0 sm:$0xff] }
  0x19   : > { %v546_v47 = vmul.f32 %v544_v46, %v544_v46  ;;  %v816_v63 = vld [vmem:[%s958_s3 + $0x4] ss:$0 sm:$0xff]  ;;  %v818_v0 = vld [vmem:[%s958_s3 + $0x5] ss:$0 sm:$0xff]  ;;  %v819_v5 = vld [vmem:[%s958_s3 + $0x6] ss:$0 sm:$0xff] }
  0x1a   : > { %391 = vmatpush.bf16.msra.mxu1 %v772_v8  ;;  %v553_v7 = vmul.f32 %v816_v63, %v544_v46 }
  0x1b   : > { %522 = vmatpush.bf16.msra.mxu3 %v789_v31  ;;  %548 = vadd.xlane.f32.xlu0 %v546_v47 }
  0x1c   : > { %457 = vmatpush.bf16.msra.mxu2 %v780_v24 }
  0x1e   : > { %392 = vmatpush.bf16.msra.mxu1 %v771_v9 }
  0x1f   : > { %523 = vmatpush.bf16.msra.mxu3 %v788_v40 }
  0x20   : > { %458 = vmatpush.bf16.msra.mxu2 %v779_v25 }
  0x22   : > { %393 = vmatpush.bf16.msra.mxu1 %v770_v10 }
  0x23   : > { %524 = vmatpush.bf16.msra.mxu3 %v787_v41  ;;  %550 = vadd.xlane.f32.xlu0 %v547_v50 }
  0x24   : > { %459 = vmatpush.bf16.msra.mxu2 %v778_v26 }
  0x26   : > { %394 = vmatpush.bf16.msra.mxu1 %v769_v11 }
  0x27   : > { %525 = vmatpush.bf16.msra.mxu3 %v786_v42 }
  0x28   : > { %460 = vmatpush.bf16.msra.mxu2 %v777_v27 }
  0x2a   : > { %395 = vmatpush.bf16.msra.mxu1 %v768_v12 }
  0x2b   : > { %526 = vmatpush.bf16.msra.mxu3 %v785_v43 }
  0x2c   : > { %461 = vmatpush.bf16.msra.mxu2 %v776_v28 }
  0x2f   : > { %527 = vmatpush.bf16.msra.mxu3 %v784_v44 }
  0x8e   : > { %v549_v62 = vpop.xlane.xlu0 %548 }
  0x8f   : > { %v557_v6 = vmul.f32 -0.5, %v549_v62 }
  0x91   : > { %v560_v10 = vmul.f32 %v819_v5, %v557_v6 }
  0x92   : > { %v331_v16 = vpop.f32.mrf.mxu0 }
  0x93   : > { %v332_v18 = vadd.f32 %v813_v17, %v331_v16 }
  0x95   : > { %820 = vtanh.f32 %v332_v18 }
  0x96   : > { %v551_v11 = vpop.xlane.xlu0 %550 }
  0x97   : > { %v558_v16 = vmul.f32 -0.5, %v551_v11 }
  0x9a   : > { %v333_v19 = vpop.f32.mrf.mxu0 }
  0x9b   : > { %v334_v20 = vadd.f32 %v813_v17, %v333_v19  ;;  %v821_v21 = vpop.eup %820  ;;  %v554_v17 = vmul.f32 %v816_v63, %v545_v49 }
  0x9d   : > { %822 = vtanh.f32 %v334_v20  ;;  %v561_v20 = vmul.f32 %v819_v5, %v558_v16 }
  0xa3   : > { %v823_v22 = vpop.eup %822 }
  0xa4   : > { %v338_v23 = vpack.c.bf16 %v823_v22, %v821_v21 }
  0xa6   : > { %396 = vmatmul.bf16.vlgmr.msra.gmra.mxu1 %v338_v23 }
 0x123   : > { %v397_v32 = vpop.f32.mrf.mxu1 }
 0x124   : > { %v398_v34 = vadd.f32 %v814_v33, %v397_v32 }
 0x126   : > { %824 = vtanh.f32 %v398_v34 }
 0x12b   : > { %v399_v35 = vpop.f32.mrf.mxu1 }
 0x12c   : > { %v400_v36 = vadd.f32 %v814_v33, %v399_v35  ;;  %v825_v37 = vpop.eup %824 }
 0x12e   : > { %826 = vtanh.f32 %v400_v36 }
 0x134   : > { %v827_v38 = vpop.eup %826 }
 0x135   : > { %v404_v39 = vpack.c.bf16 %v827_v38, %v825_v37 }
 0x137   : > { %462 = vmatmul.bf16.vlgmr.msra.gmra.mxu2 %v404_v39 }
 0x1ba   : > { %v463_v51 = vpop.f32.mrf.mxu2 }
 0x1bb   : > { %v464_v53 = vadd.f32 %v815_v52, %v463_v51 }
 0x1bd   : > { %828 = vtanh.f32 %v464_v53 }
 0x1c2   : > { %v465_v54 = vpop.f32.mrf.mxu2 }
 0x1c3   : > { %v466_v55 = vadd.f32 %v815_v52, %v465_v54  ;;  %v829_v56 = vpop.eup %828 }
 0x1c5   : > { %830 = vtanh.f32 %v466_v55 }
 0x1cb   : > { %v831_v57 = vpop.eup %830 }
 0x1cc   : > { %v470_v58 = vpack.c.bf16 %v831_v57, %v829_v56 }
 0x1ce   : > { %528 = vmatmul.bf16.vlgmr.msra.gmra.mxu3 %v470_v58 }
 0x251   : > { %v529_v60 = vpop.f32.mrf.mxu3 }
 0x252   : > { %v530_v61 = vadd.f32 %v817_v59, %v529_v60 }
 0x254   : > { %832 = vtanh.f32 %v530_v61 }
 0x259   : > { %v531_v1 = vpop.f32.mrf.mxu3 }
 0x25a   : > { %v833_v2 = vpop.eup %832  ;;  %v532_v3 = vadd.f32 %v817_v59, %v531_v1 }
 0x25b   : > { %v536_v4 = vsub.f32 %v833_v2, %v530_v61 }
 0x25c   : > { %834 = vtanh.f32 %v532_v3 }
 0x25d   : > { %v539_v8 = vmul.f32 %v818_v0, %v536_v4 }
 0x25f   : > { %v541_v9 = vadd.f32 %v539_v8, %v530_v61 }
 0x261   : > { %v555_v12 = vadd.f32 %v553_v7, %v541_v9 }
 0x262   : > { %v835_v13 = vpop.eup %834 }
 0x263   : > { %v537_v14 = vsub.f32 %v835_v13, %v532_v3  ;;  %v562_v15 = vadd.f32 %v560_v10, %v555_v12 }
 0x265   : > { %v540_v18 = vmul.f32 %v818_v0, %v537_v14  ;;  %564 = vst [vmem:[%s238_s23] sm:$0xff] %v562_v15 }
 0x267   : > { %v542_v19 = vadd.f32 %v540_v18, %v532_v3 }
 0x269   : > { %v556_v21 = vadd.f32 %v554_v17, %v542_v19 }
 0x26b   : > { %v563_v22 = vadd.f32 %v561_v20, %v556_v21 }
 0x26d   : > { %565 = vst [vmem:[%s238_s23 + $0x8] sm:$0xff] %v563_v22 }
 0x26e PF: > { %s15_s15 = sadd.s32 1, %s876_s15  }
 0x26f   : > { %p12_p7 = scmp.ge.s32.totalorder %s15_s15, 5  }
 0x271   :  { %14 = sbr.rel (!%p12_p7) target bundleno = 1 (0x1), region = 74 }
 0x276   :  { %588 = vsyncpa [#allocation3], 1 }
 0x277   :  { %590 = vsyncpa [#allocation3 + $0x1], 1 }

</bundles_post_ra>
